<compile_context>
chip_gen: v7x
topology: tpu7x:2x2x1
jax: 0.10.0
libtpu: 0.0.40
codegen_flags: <defaults>
</compile_context>

<pallas_src>
import functools

import jax
import jax.numpy as jnp
import numpy as np
from jax.experimental import pallas as pl
from jax.experimental.pallas import tpu as pltpu


def custom_layer_kernel(x_ref, t_ref, b_ref, s_ref, o_ref, *,
                        n_lower, n_upper, bin_lower, bin_upper):
    nu_bu = n_upper * bin_upper
    bb = x_ref.shape[0]
    bl = bin_lower

    def unit_pw(k):
        # (bb, bl) x (bl, nu_bu) -> (bb, nu_bu); K is tiny but the MXU is idle anyway.
        pw = jnp.dot(x_ref[:, k * bl:(k + 1) * bl], t_ref[k],
                     preferred_element_type=jnp.float32)
        return jnp.clip(pw, 1e-15, 1e15)

    # --- per-pair products before log (~2x fewer EUP log passes); every live
    #     intermediate stays (bb, nu_bu): no 4x-wide pw spill, smaller VMEM scratch ---
    logsum = None
    k = 0
    while k + 1 < n_lower:                       # static Python unroll (n_lower small)
        term = jnp.log(unit_pw(k) * unit_pw(k + 1))   # pair product in [1e-30, 1e30]
        if logsum is None:
            logsum = term + b_ref[...]           # fold log-exp bias into first pass
        else:
            logsum = logsum + term
        k += 2
    if k < n_lower:                              # odd leftover lower unit
        term = jnp.log(unit_pw(k))
        logsum = term + b_ref[...] if logsum is None else logsum + term

    # --- lane-dense segmented softmax over contiguous groups of bin_upper lanes ---
    # Per-group max: butterfly of within-group cyclic rotations. pltpu.roll keeps the
    # data 128 lanes wide on the XLU; no (bb, n_upper, bin_upper) relayout anywhere.
    lane_in_group = jax.lax.broadcasted_iota(jnp.int32, (bb, nu_bu), 1) % bin_upper
    m = logsum
    s = 1
    while s < bin_upper:
        src_lo = pltpu.roll(m, s, axis=1)                         # lane i <- i - s
        src_hi = pltpu.roll(m, (s - bin_upper) % nu_bu, axis=1)   # lane i <- i - s + g
        m = jnp.maximum(m, jnp.where(lane_in_group >= s, src_lo, src_hi))
        s *= 2

    e = jnp.exp(logsum - m)                      # full-width EUP pass (key win)
    # Group sum (+ broadcast back across the group) in one MXU matmul against the
    # block-diagonal ones matrix; keeps everything lane-dense.
    z = jnp.dot(e, s_ref[...], preferred_element_type=jnp.float32)
    o_ref[...] = e * pl.reciprocal(z, approx=False)   # single lane-dense store


def _pick_block_batch(batch: int, block_batch: int) -> int:
    if batch <= 8:
        return batch                      # single tiny tile; block == full dim is legal
    bb = min(block_batch, batch)
    if batch >= 16:
        # keep >= 2 grid steps so megacore (v7x) and DMA pipelining have work to split
        half = ((batch + 1) // 2 + 7) // 8 * 8
        bb = min(bb, half)
    bb = max(8, (bb // 8) * 8)            # sublane-align; never fall back to full batch
    return bb


def custom_layer_forward(x, T3, B_flat, S_bd, *, n_lower, n_upper, bin_lower, bin_upper,
                         block_batch=2048):
    batch = x.shape[0]
    nu_bu = n_upper * bin_upper
    kl = n_lower * bin_lower
    x_flat = x.reshape(batch, kl)

    bb = _pick_block_batch(batch, block_batch)
    grid = (pl.cdiv(batch, bb),)

    kernel = functools.partial(custom_layer_kernel, n_lower=n_lower, n_upper=n_upper,
                               bin_lower=bin_lower, bin_upper=bin_upper)

    cost = pl.CostEstimate(
        flops=int(2 * batch * n_lower * bin_lower * nu_bu + 2 * batch * nu_bu * nu_bu),
        transcendentals=int(batch * nu_bu * ((n_lower + 1) // 2 + 2)),
        bytes_accessed=int(4 * (batch * kl + batch * nu_bu
                                + T3.size + B_flat.size + S_bd.size)),
    )

    out2d = pl.pallas_call(
        kernel,
        out_shape=jax.ShapeDtypeStruct((batch, nu_bu), jnp.float32),
        grid_spec=pltpu.PrefetchScalarGridSpec(
            num_scalar_prefetch=0,
            grid=grid,
            in_specs=[
                pl.BlockSpec((bb, kl), lambda i: (i, 0)),                    # x tile
                pl.BlockSpec((n_lower, bin_lower, nu_bu), lambda i: (0, 0, 0)),  # T3
                pl.BlockSpec((1, nu_bu), lambda i: (0, 0)),                  # bias
                pl.BlockSpec((nu_bu, nu_bu), lambda i: (0, 0)),              # ones blkdiag
            ],
            out_specs=pl.BlockSpec((bb, nu_bu), lambda i: (i, 0)),
        ),
        compiler_params=pltpu.CompilerParams(
            dimension_semantics=("parallel",),
            vmem_limit_bytes=48 * 1024 * 1024,
        ),
        cost_estimate=cost,
    )(x_flat, T3, B_flat, S_bd)
    return out2d.reshape(batch, n_upper, bin_upper)


def make_params(n_lower, n_upper, weight_init=0.1, seed=0):
    # deterministic stand-in for torch uniform_(-w, w) / uniform_(0, 1) init
    key = jax.random.PRNGKey(seed)
    k1, k2, k3, k4, k5 = jax.random.split(key, 5)
    weights = jax.random.uniform(k1, (n_upper, n_lower), jnp.float32,
                                 -weight_init, weight_init)
    abs_bias = jax.random.uniform(k2, (n_upper, 1), jnp.float32,
                                  -weight_init, weight_init)
    quad_bias = jax.random.uniform(k3, (n_upper, 1), jnp.float32,
                                   -weight_init, weight_init)
    abs_lambda = jax.random.uniform(k4, (n_upper, 1), jnp.float32, 0.0, 1.0)
    quad_lambda = jax.random.uniform(k5, (n_upper, 1), jnp.float32, 0.0, 1.0)
    return weights, abs_bias, quad_bias, abs_lambda, quad_lambda


def make_D(bin_lower, bin_upper):
    si = np.arange(bin_lower, dtype=np.float64)
    sk = np.arange(bin_upper, dtype=np.float64)
    si_mat = np.tile(si, (bin_upper, 1))
    sk_mat = np.tile(sk[:, None], (1, bin_lower))
    D = np.exp(-(sk_mat / bin_upper - si_mat / bin_lower) ** 2)
    return jnp.asarray(D, dtype=jnp.float32)     # (bin_upper, bin_lower)


def make_kernel_operands(weights, abs_bias, quad_bias, abs_lambda, quad_lambda,
                         n_lower, n_upper, bin_lower, bin_upper):
    # parameter-only precompute (plain JAX, batch-independent)
    D = make_D(bin_lower, bin_upper)                                  # (bu, bl)
    # T[j, k, l, m] = D[l, m] ** weights[j, k]
    T = D[None, None, :, :] ** weights[:, :, None, None]              # (nu, nl, bu, bl)
    # T3[k, m, j*bu + l] = T[j, k, l, m]   -- dense per lower unit (no zero blocks)
    T3 = jnp.transpose(T, (1, 3, 0, 2)).reshape(
        n_lower, bin_lower, n_upper * bin_upper)                      # (nl, bl, nu*bu)
    # B[j, l] = -quad_bias*(l/bu - quad_lambda)^2 - abs_bias*|l/bu - abs_lambda|
    s0 = jnp.arange(bin_upper, dtype=jnp.float32)[None, :] / bin_upper
    B = (-quad_bias * (s0 - quad_lambda) ** 2
         - abs_bias * jnp.abs(s0 - abs_lambda))                       # (nu, bu)
    B_flat = B.reshape(1, n_upper * bin_upper)
    # block-diagonal ones matrix: group-sum + broadcast in a single MXU matmul
    S_bd = jnp.kron(jnp.eye(n_upper, dtype=jnp.float32),
                    jnp.ones((bin_upper, bin_upper), jnp.float32))    # (nu*bu, nu*bu)
    return T3, B_flat, S_bd


def reference_forward(x, weights, abs_bias, quad_bias, abs_lambda, quad_lambda,
                      n_lower, n_upper, bin_lower, bin_upper):
    # pure-JAX re-implementation of the PyTorch forward, for validation
    D = make_D(bin_lower, bin_upper)
    T = D[None, None, :, :] ** weights[:, :, None, None]          # (nu, nl, bu, bl)
    Pw = jnp.einsum('jklm,ikm->ijkl', T, x)                       # (b, nu, nl, bu)
    Pw = jnp.clip(Pw, 1e-15, 1e15)
    logsum = jnp.sum(jnp.log(Pw), axis=2)                         # (b, nu, bu)
    s0 = jnp.arange(bin_upper, dtype=jnp.float32)[None, :] / bin_upper
    B = (-quad_bias * (s0 - quad_lambda) ** 2
         - abs_bias * jnp.abs(s0 - abs_lambda))
    lsB = logsum + B[None]
    m = jnp.max(lsB, axis=2, keepdims=True)
    e = jnp.exp(lsB - m)
    return e / jnp.sum(e, axis=2, keepdims=True)


if __name__ == "__main__":
    # small shapes consistent with the module
    n_lower, n_upper, bin_lower, bin_upper = 4, 8, 16, 16

    params = make_params(n_lower, n_upper, weight_init=0.1, seed=0)
    weights, abs_bias, quad_bias, abs_lambda, quad_lambda = params

    T3, B_flat, S_bd = make_kernel_operands(weights, abs_bias, quad_bias, abs_lambda,
                                            quad_lambda, n_lower, n_upper,
                                            bin_lower, bin_upper)

    def check(key, batch, **fwd_kwargs):
        x = jax.random.uniform(key, (batch, n_lower, bin_lower), jnp.float32, 0.0, 1.0)
        y = custom_layer_forward(x, T3, B_flat, S_bd, n_lower=n_lower, n_upper=n_upper,
                                 bin_lower=bin_lower, bin_upper=bin_upper, **fwd_kwargs)
        y = jax.block_until_ready(y)
        y_ref = reference_forward(x, weights, abs_bias, quad_bias, abs_lambda,
                                  quad_lambda, n_lower, n_upper, bin_lower, bin_upper)
        y_ref = jax.block_until_ready(y_ref)
        np.testing.assert_allclose(np.asarray(y), np.asarray(y_ref),
                                   rtol=1e-5, atol=1e-6)

    # test 1: tiny batch (single tile, block == full batch dim)
    check(jax.random.PRNGKey(0), 2)
    # test 2: default tiling -> batch split into >= 2 grid steps (megacore path)
    check(jax.random.PRNGKey(1), 48)
    # test 3: small explicit tile -> grid of 3 pipelined steps
    check(jax.random.PRNGKey(2), 48, block_batch=16)
    # test 4: batch not a multiple of the tile -> padded last tile (valid rows unaffected)
    check(jax.random.PRNGKey(3), 50)

    print("KERNEL_OK")
</pallas_src>

<mosaic_0001>
module attributes {stable_mosaic.version = 11 : i64} {
  func.func @custom_layer_kernel(%arg0: i32, %arg1: memref<2x64xf32, #tpu.memory_space<vmem>>, %arg2: memref<4x16x128xf32, #tpu.memory_space<vmem>>, %arg3: memref<1x128xf32, #tpu.memory_space<vmem>>, %arg4: memref<128x128xf32, #tpu.memory_space<vmem>>, %arg5: memref<2x128xf32, #tpu.memory_space<vmem>>) attributes {dimension_semantics = [#tpu.dimension_semantics<parallel>], iteration_bounds = array<i64: 1>, scalar_prefetch = 0 : i64, scratch_operands = 0 : i64, tpu.core_type = #tpu.core_type<tc>, window_params = [{transform_indices = @transform_0, window_bounds = array<i64: 2, 64>}, {pipeline_mode = #tpu.pipeline_mode<synchronous>, transform_indices = @transform_1, window_bounds = array<i64: 4, 16, 128>}, {pipeline_mode = #tpu.pipeline_mode<synchronous>, transform_indices = @transform_2, window_bounds = array<i64: 1, 128>}, {pipeline_mode = #tpu.pipeline_mode<synchronous>, transform_indices = @transform_3, window_bounds = array<i64: 128, 128>}, {transform_indices = @transform_4, window_bounds = array<i64: 2, 128>}]} {
    %c0 = arith.constant 0 : index
    %c0_0 = arith.constant 0 : index
    %0 = vector.load %arg1[%c0, %c0_0] : memref<2x64xf32, #tpu.memory_space<vmem>>, vector<2x16xf32>
    %c0_1 = arith.constant 0 : index
    %c0_2 = arith.constant 0 : index
    %c0_3 = arith.constant 0 : index
    %1 = vector.load %arg2[%c0_1, %c0_2, %c0_3] : memref<4x16x128xf32, #tpu.memory_space<vmem>>, vector<1x16x128xf32>
    %2 = vector.shape_cast %1 : vector<1x16x128xf32> to vector<16x128xf32>
    %cst = arith.constant dense<0.000000e+00> : vector<2x128xf32>
    %3 = tpu.matmul %0, %2, %cst {dimension_numbers = #tpu.dot_dimension_numbers<[1], [0], [0], [1], [0, 0, 1, 1], [], []>} : vector<2x16xf32>, vector<16x128xf32>, vector<2x128xf32> -> vector<2x128xf32>
    %cst_4 = arith.constant 1.000000e-15 : f32
    %cst_5 = arith.constant 9.99999986E+14 : f32
    %4 = vector.broadcast %cst_4 : f32 to vector<2x128xf32>
    %5 = arith.maximumf %4, %3 : vector<2x128xf32>
    %6 = vector.broadcast %cst_5 : f32 to vector<2x128xf32>
    %7 = arith.minimumf %6, %5 : vector<2x128xf32>
    %c0_6 = arith.constant 0 : index
    %c16 = arith.constant 16 : index
    %8 = vector.load %arg1[%c0_6, %c16] : memref<2x64xf32, #tpu.memory_space<vmem>>, vector<2x16xf32>
    %c1 = arith.constant 1 : index
    %c0_7 = arith.constant 0 : index
    %c0_8 = arith.constant 0 : index
    %9 = vector.load %arg2[%c1, %c0_7, %c0_8] : memref<4x16x128xf32, #tpu.memory_space<vmem>>, vector<1x16x128xf32>
    %10 = vector.shape_cast %9 : vector<1x16x128xf32> to vector<16x128xf32>
    %cst_9 = arith.constant dense<0.000000e+00> : vector<2x128xf32>
    %11 = tpu.matmul %8, %10, %cst_9 {dimension_numbers = #tpu.dot_dimension_numbers<[1], [0], [0], [1], [0, 0, 1, 1], [], []>} : vector<2x16xf32>, vector<16x128xf32>, vector<2x128xf32> -> vector<2x128xf32>
    %cst_10 = arith.constant 1.000000e-15 : f32
    %cst_11 = arith.constant 9.99999986E+14 : f32
    %12 = vector.broadcast %cst_10 : f32 to vector<2x128xf32>
    %13 = arith.maximumf %12, %11 : vector<2x128xf32>
    %14 = vector.broadcast %cst_11 : f32 to vector<2x128xf32>
    %15 = arith.minimumf %14, %13 : vector<2x128xf32>
    %16 = arith.mulf %7, %15 : vector<2x128xf32>
    %17 = math.log %16 : vector<2x128xf32>
    %c0_12 = arith.constant 0 : index
    %c0_13 = arith.constant 0 : index
    %18 = vector.load %arg3[%c0_12, %c0_13] : memref<1x128xf32, #tpu.memory_space<vmem>>, vector<1x128xf32>
    %19 = vector.broadcast %18 : vector<1x128xf32> to vector<2x128xf32>
    %20 = arith.addf %17, %19 : vector<2x128xf32>
    %c0_14 = arith.constant 0 : index
    %c32 = arith.constant 32 : index
    %21 = vector.load %arg1[%c0_14, %c32] : memref<2x64xf32, #tpu.memory_space<vmem>>, vector<2x16xf32>
    %c2 = arith.constant 2 : index
    %c0_15 = arith.constant 0 : index
    %c0_16 = arith.constant 0 : index
    %22 = vector.load %arg2[%c2, %c0_15, %c0_16] : memref<4x16x128xf32, #tpu.memory_space<vmem>>, vector<1x16x128xf32>
    %23 = vector.shape_cast %22 : vector<1x16x128xf32> to vector<16x128xf32>
    %cst_17 = arith.constant dense<0.000000e+00> : vector<2x128xf32>
    %24 = tpu.matmul %21, %23, %cst_17 {dimension_numbers = #tpu.dot_dimension_numbers<[1], [0], [0], [1], [0, 0, 1, 1], [], []>} : vector<2x16xf32>, vector<16x128xf32>, vector<2x128xf32> -> vector<2x128xf32>
    %cst_18 = arith.constant 1.000000e-15 : f32
    %cst_19 = arith.constant 9.99999986E+14 : f32
    %25 = vector.broadcast %cst_18 : f32 to vector<2x128xf32>
    %26 = arith.maximumf %25, %24 : vector<2x128xf32>
    %27 = vector.broadcast %cst_19 : f32 to vector<2x128xf32>
    %28 = arith.minimumf %27, %26 : vector<2x128xf32>
    %c0_20 = arith.constant 0 : index
    %c48 = arith.constant 48 : index
    %29 = vector.load %arg1[%c0_20, %c48] : memref<2x64xf32, #tpu.memory_space<vmem>>, vector<2x16xf32>
    %c3 = arith.constant 3 : index
    %c0_21 = arith.constant 0 : index
    %c0_22 = arith.constant 0 : index
    %30 = vector.load %arg2[%c3, %c0_21, %c0_22] : memref<4x16x128xf32, #tpu.memory_space<vmem>>, vector<1x16x128xf32>
    %31 = vector.shape_cast %30 : vector<1x16x128xf32> to vector<16x128xf32>
    %cst_23 = arith.constant dense<0.000000e+00> : vector<2x128xf32>
    %32 = tpu.matmul %29, %31, %cst_23 {dimension_numbers = #tpu.dot_dimension_numbers<[1], [0], [0], [1], [0, 0, 1, 1], [], []>} : vector<2x16xf32>, vector<16x128xf32>, vector<2x128xf32> -> vector<2x128xf32>
    %cst_24 = arith.constant 1.000000e-15 : f32
    %cst_25 = arith.constant 9.99999986E+14 : f32
    %33 = vector.broadcast %cst_24 : f32 to vector<2x128xf32>
    %34 = arith.maximumf %33, %32 : vector<2x128xf32>
    %35 = vector.broadcast %cst_25 : f32 to vector<2x128xf32>
    %36 = arith.minimumf %35, %34 : vector<2x128xf32>
    %37 = arith.mulf %28, %36 : vector<2x128xf32>
    %38 = math.log %37 : vector<2x128xf32>
    %39 = arith.addf %20, %38 : vector<2x128xf32>
    %40 = tpu.iota {dimensions = array<i32: 1>} : vector<2x128xi32>
    %c16_i32 = arith.constant 16 : i32
    %c0_i32 = arith.constant 0 : i32
    %41 = arith.cmpi eq, %c16_i32, %c0_i32 : i32
    %c1_i32 = arith.constant 1 : i32
    %42 = arith.select %41, %c1_i32, %c16_i32 : i32
    %43 = vector.broadcast %42 : i32 to vector<2x128xi32>
    %44 = arith.remsi %40, %43 : vector<2x128xi32>
    %c0_i32_26 = arith.constant 0 : i32
    %45 = vector.broadcast %c0_i32_26 : i32 to vector<2x128xi32>
    %46 = arith.cmpi ne, %44, %45 : vector<2x128xi32>
    %c0_i32_27 = arith.constant 0 : i32
    %47 = vector.broadcast %c0_i32_27 : i32 to vector<2x128xi32>
    %48 = arith.cmpi slt, %44, %47 : vector<2x128xi32>
    %c0_i32_28 = arith.constant 0 : i32
    %49 = arith.cmpi slt, %42, %c0_i32_28 : i32
    %50 = vector.broadcast %49 : i1 to vector<2x128xi1>
    %51 = vector.broadcast %50 : vector<2x128xi1> to vector<2x128xi1>
    %52 = arith.xori %48, %51 : vector<2x128xi1>
    %53 = arith.andi %52, %46 : vector<2x128xi1>
    %54 = vector.broadcast %42 : i32 to vector<2x128xi32>
    %55 = arith.addi %44, %54 : vector<2x128xi32>
    %56 = arith.select %53, %55, %44 : vector<2x128xi1>, vector<2x128xi32>
    %c1_i32_29 = arith.constant 1 : i32
    %57 = tpu.dynamic_rotate %39 by %c1_i32_29 dim 1 : vector<2x128xf32>, i32 -> vector<2x128xf32>
    %c113_i32 = arith.constant 113 : i32
    %58 = tpu.dynamic_rotate %39 by %c113_i32 dim 1 : vector<2x128xf32>, i32 -> vector<2x128xf32>
    %c1_i32_30 = arith.constant 1 : i32
    %59 = vector.broadcast %c1_i32_30 : i32 to vector<2x128xi32>
    %60 = arith.cmpi sge, %56, %59 : vector<2x128xi32>
    %61 = arith.select %60, %57, %58 : vector<2x128xi1>, vector<2x128xf32>
    %62 = arith.maximumf %39, %61 : vector<2x128xf32>
    %c2_i32 = arith.constant 2 : i32
    %63 = tpu.dynamic_rotate %62 by %c2_i32 dim 1 : vector<2x128xf32>, i32 -> vector<2x128xf32>
    %c114_i32 = arith.constant 114 : i32
    %64 = tpu.dynamic_rotate %62 by %c114_i32 dim 1 : vector<2x128xf32>, i32 -> vector<2x128xf32>
    %c2_i32_31 = arith.constant 2 : i32
    %65 = vector.broadcast %c2_i32_31 : i32 to vector<2x128xi32>
    %66 = arith.cmpi sge, %56, %65 : vector<2x128xi32>
    %67 = arith.select %66, %63, %64 : vector<2x128xi1>, vector<2x128xf32>
    %68 = arith.maximumf %62, %67 : vector<2x128xf32>
    %c4_i32 = arith.constant 4 : i32
    %69 = tpu.dynamic_rotate %68 by %c4_i32 dim 1 : vector<2x128xf32>, i32 -> vector<2x128xf32>
    %c116_i32 = arith.constant 116 : i32
    %70 = tpu.dynamic_rotate %68 by %c116_i32 dim 1 : vector<2x128xf32>, i32 -> vector<2x128xf32>
    %c4_i32_32 = arith.constant 4 : i32
    %71 = vector.broadcast %c4_i32_32 : i32 to vector<2x128xi32>
    %72 = arith.cmpi sge, %56, %71 : vector<2x128xi32>
    %73 = arith.select %72, %69, %70 : vector<2x128xi1>, vector<2x128xf32>
    %74 = arith.maximumf %68, %73 : vector<2x128xf32>
    %c8_i32 = arith.constant 8 : i32
    %75 = tpu.dynamic_rotate %74 by %c8_i32 dim 1 : vector<2x128xf32>, i32 -> vector<2x128xf32>
    %c120_i32 = arith.constant 120 : i32
    %76 = tpu.dynamic_rotate %74 by %c120_i32 dim 1 : vector<2x128xf32>, i32 -> vector<2x128xf32>
    %c8_i32_33 = arith.constant 8 : i32
    %77 = vector.broadcast %c8_i32_33 : i32 to vector<2x128xi32>
    %78 = arith.cmpi sge, %56, %77 : vector<2x128xi32>
    %79 = arith.select %78, %75, %76 : vector<2x128xi1>, vector<2x128xf32>
    %80 = arith.maximumf %74, %79 : vector<2x128xf32>
    %81 = arith.subf %39, %80 : vector<2x128xf32>
    %82 = math.exp %81 : vector<2x128xf32>
    %c0_34 = arith.constant 0 : index
    %c0_35 = arith.constant 0 : index
    %83 = vector.load %arg4[%c0_34, %c0_35] : memref<128x128xf32, #tpu.memory_space<vmem>>, vector<128x128xf32>
    %cst_36 = arith.constant dense<0.000000e+00> : vector<2x128xf32>
    %84 = tpu.matmul %82, %83, %cst_36 {dimension_numbers = #tpu.dot_dimension_numbers<[1], [0], [0], [1], [0, 0, 1, 1], [], []>} : vector<2x128xf32>, vector<128x128xf32>, vector<2x128xf32> -> vector<2x128xf32>
    %85 = tpu.reciprocal %84 : vector<2x128xf32> -> vector<2x128xf32>
    %86 = arith.mulf %82, %85 : vector<2x128xf32>
    %c0_37 = arith.constant 0 : index
    %c0_38 = arith.constant 0 : index
    %87 = vector.load %arg5[%c0_37, %c0_38] : memref<2x128xf32, #tpu.memory_space<vmem>>, vector<2x128xf32>
    tpu.vector_store %arg5[%c0_37, %c0_38], %86 {strides = array<i32>} : memref<2x128xf32, #tpu.memory_space<vmem>>, vector<2x128xf32>,
    return
  }
  func.func @transform_0(%arg0: i32) -> (i32, i32) {
    %c0_i32 = arith.constant 0 : i32
    %c0_i32_0 = arith.constant 0 : i32
    return %arg0, %c0_i32 : i32, i32
  }
  func.func @transform_1(%arg0: i32) -> (i32, i32, i32) {
    %c0_i32 = arith.constant 0 : i32
    %c0_i32_0 = arith.constant 0 : i32
    %c0_i32_1 = arith.constant 0 : i32
    %c0_i32_2 = arith.constant 0 : i32
    return %c0_i32, %c0_i32_0, %c0_i32_1 : i32, i32, i32
  }
  func.func @transform_2(%arg0: i32) -> (i32, i32) {
    %c0_i32 = arith.constant 0 : i32
    %c0_i32_0 = arith.constant 0 : i32
    %c0_i32_1 = arith.constant 0 : i32
    return %c0_i32, %c0_i32_0 : i32, i32
  }
  func.func @transform_3(%arg0: i32) -> (i32, i32) {
    %c0_i32 = arith.constant 0 : i32
    %c0_i32_0 = arith.constant 0 : i32
    %c0_i32_1 = arith.constant 0 : i32
    return %c0_i32, %c0_i32_0 : i32, i32
  }
  func.func @transform_4(%arg0: i32) -> (i32, i32) {
    %c0_i32 = arith.constant 0 : i32
    %c0_i32_0 = arith.constant 0 : i32
    return %arg0, %c0_i32 : i32, i32
  }
}

</mosaic_0001>

<bundles_post_ra>
// kernel: tpu_custom_call.1
= control target key start
LH: loop header
LB: loop body
LE: loop exit
PB: predicated region body
PF: predicated region fallthrough
CT: control target
= control target key end

     0   :  { %9 = vsyncpa [#allocation3], 0  ;;  %s927_s0 = inlined_call_operand.hbm [shape: f32[2,64], index: 0, kind: input, shape index: {}]   ;;  %s928_s1 = inlined_call_operand.hbm [shape: f32[4,16,128], index: 1, kind: input, shape index: {}]   ;;  %s929_s2 = inlined_call_operand.vmem [shape: f32[1,128], index: 2, kind: input, shape index: {}]   ;;  %s930_s3 = inlined_call_operand.hbm [shape: f32[128,128], index: 3, kind: input, shape index: {}]   ;;  %s931_s4 = inlined_call_operand.hbm [shape: f32[2,128], index: 4, kind: output, shape index: {}]  }
   0x1   :  { %10 = vsyncpa [#allocation6], 0 }
   0x2   :  { %11 = vsyncpa [#allocation4], 0  ;;  %s792_s15 = smov [#allocation5]   ;;  %s698_s19 = scalar_lea.hbm %s928_s1, 1024 }
   0x3   :  { %s27_s16 = sshll.u32 %s792_s15, 4  ;;  %p699_p0 = scmp.ne.s32.totalorder %s928_s1, %s698_s19  ;;  %s28_s16 = int_to_ptr.vmem [resolvable:$true] %s27_s16 }
   0x4   :  { %p702_p1 = scmp.lt.u32.totalorder %s698_s19, %s928_s1 }
   0x6   :  { %p704_p2 = pnand %p702_p1, %p699_p0 }
   0x8   :  { %707 = shalt.err (!%p704_p2)
}
   0x9   :  { %s708_s24 = scalar_lea.vmem %s28_s16, 1024  ;;  %p713_p4 = scmp.lt.s32.totalorder %s28_s16, %s28_s16 }
   0xa   :  { %p709_p3 = scmp.ne.s32.totalorder %s28_s16, %s708_s24  ;;  %p714_p5 = scmp.lt.s32.totalorder %s708_s24, %s708_s24 }
   0xc   :  { %p715_p6 = por %p714_p5, %p713_p4 }
   0xe   :  { %p716_p7 = pnand %p715_p6, %p709_p3 }
  0x10   :  { %719 = shalt.err (!%p716_p7)
}
  0x11   :  { %s793_s25 = smov 128   ;;  %s794_s26 = smov 8  }
  0x12   :  { %33 = dma.hbm_to_vmem [thread:$0]  %s928_s1, 1024, %s28_s16, [#allocation6], %s793_s25, %s793_s25, %s794_s26  }
  0x13   :  { %s795_s29 = smov [#allocation2]   ;;  %s796_s5 = smov [#allocation7]  }
  0x14   :  { %s18_s30 = sshll.u32 %s795_s29, 4  ;;  %s41_s6 = sshll.u32 %s796_s5, 4  ;;  %s19_s30 = int_to_ptr.vmem [resolvable:$true] %s18_s30  ;;  %s42_s6 = int_to_ptr.vmem [resolvable:$true] %s41_s6 }
  0x15   :  { %s720_s9 = scalar_lea.hbm %s927_s0, 32 }
  0x16   :  { %p721_p8 = scmp.ne.s32.totalorder %s927_s0, %s720_s9  ;;  %p724_p9 = scmp.lt.u32.totalorder %s720_s9, %s927_s0 }
  0x18   :  { %p726_p10 = pnand %p724_p9, %p721_p8 }
  0x1a   :  { %729 = shalt.err (!%p726_p10)
}
  0x1b   :  { %s730_s1 = scalar_lea.vmem %s19_s30, 32  ;;  %p735_p12 = scmp.lt.s32.totalorder %s19_s30, %s19_s30 }
  0x1c   :  { %p731_p11 = scmp.ne.s32.totalorder %s19_s30, %s730_s1  ;;  %p736_p13 = scmp.lt.s32.totalorder %s730_s1, %s730_s1 }
  0x1e   :  { %p737_p0 = por %p736_p13, %p735_p12 }
  0x20   :  { %p738_p1 = pnand %p737_p0, %p731_p11 }
  0x22   :  { %741 = shalt.err (!%p738_p1)
}
  0x23   :  { %21 = dma.hbm_to_vmem [thread:$0]  %s927_s0, 32, %s19_s30, [#allocation3]  }
  0x24   :  { %s742_s18 = scalar_lea.hbm %s930_s3, 2048 }
  0x25   :  { %p743_p2 = scmp.ne.s32.totalorder %s930_s3, %s742_s18  ;;  %p746_p3 = scmp.lt.u32.totalorder %s742_s18, %s930_s3 }
  0x27   :  { %p748_p4 = pnand %p746_p3, %p743_p2 }
  0x29   :  { %751 = shalt.err (!%p748_p4)
}
  0x2a   :  { %s752_s23 = scalar_lea.vmem %s42_s6, 2048  ;;  %p757_p6 = scmp.lt.s32.totalorder %s42_s6, %s42_s6 }
  0x2b   :  { %p753_p5 = scmp.ne.s32.totalorder %s42_s6, %s752_s23  ;;  %p758_p7 = scmp.lt.s32.totalorder %s752_s23, %s752_s23 }
  0x2d   :  { %p759_p8 = por %p758_p7, %p757_p6 }
  0x2f   :  { %p760_p9 = pnand %p759_p8, %p753_p5 }
  0x31   :  { %763 = shalt.err (!%p760_p9)
}
  0x32   :  { %47 = dma.hbm_to_vmem [thread:$0]  %s930_s3, 2048, %s42_s6, [#allocation6], %s793_s25, %s793_s25, %s794_s26  }
  0x33   :  { %786 = dma.done.wait [#allocation3], 32  }
  0x34   :  { %787 = vsyncadd [#allocation3], 4294967264 }
  0x35   :  { %788 = dma.done.wait [#allocation6], 3072  }
  0x36   :  { %789 = vsyncadd [#allocation6], 4294964224  ;;  %v797_v0 = vmov 0.0|0.0   ;;  %vm798_vm0 = vmmov 0   ;;  %v799_v1 = vmov 0.0   ;;  %v58_v3 = vld [vmem:[#allocation5] sm:$0xff]  ;;  %v388_v43 = vlaneseq }
  0x37   :  { %635 = vmatprep.subr.bf16.mxu1 %v797_v0  ;;  %647 = vmatprep.subr.bf16.mxu0 %v797_v0  ;;  %v57_v2 = vld [vmem:[#allocation2] sm:$0x3]  ;;  %v59_v4 = vld [vmem:[#allocation5 + $0x8] sm:$0xff]  ;;  %s800_s27 = smov 112   ;;  %s801_s3 = smov 80   ;;  %v137_v6 = vld [vmem:[#allocation5 + $0x10] sm:$0xff] }
  0x38   :  { %576 = vmatprep.mubr.msk.f32.mxu1 %vm798_vm0, %v799_v1  ;;  %632 = vmatprep.mubr.msk.f32.mxu0 %vm798_vm0, %v799_v1  ;;  %v636_v5 = vpack.c.bf16 %v59_v4, %v58_v3  ;;  %v138_v7 = vld [vmem:[#allocation5 + $0x18] sm:$0xff]  ;;  %vm60_vm1 = vcmask 130048   ;;  %s802_s25 = smov 96   ;;  %v227_v9 = vld [vmem:[#allocation5 + $0x20] sm:$0xff]  ;;  %v228_v10 = vld [vmem:[#allocation5 + $0x28] sm:$0xff]  ;;  %s803_s30 = smov 113  }
  0x39   :  { %139 = vrot.lane.b32.xlu0 %v57_v2, %s800_s27  ;;  %308 = vrot.lane.b32.xlu1 %v57_v2, %s801_s3  ;;  %v639_v8 = vpack.c.bf16 %v138_v7, %v137_v6  ;;  %v642_v11 = vpack.c.bf16 %v228_v10, %v227_v9  ;;  %v306_v12 = vld [vmem:[#allocation5 + $0x30] sm:$0xff]  ;;  %v307_v13 = vld [vmem:[#allocation5 + $0x38] sm:$0xff]  ;;  %s804_s5 = smov 1   ;;  %v389_v44 = vand.u32 127, %v388_v43  ;;  %s806_s6 = smov 2   ;;  %v433_v50 = vld [vmem:[#allocation7] sm:$0xff] }
  0x3a   :  { %637 = vmatpush3.bf16.msra.mxu1 %v636_v5  ;;  %v645_v15 = vpack.c.bf16 %v307_v13, %v306_v12  ;;  %v540_v38 = vld [vmem:[%s929_s2] ss:$0 sm:$0xff]  ;;  %s805_s2 = smov 114   ;;  %v434_v51 = vld [vmem:[#allocation7 + $0x8] sm:$0xff]  ;;  %v435_v52 = vld [vmem:[#allocation7 + $0x10] sm:$0xff]  ;;  %s807_s7 = smov 116  }
  0x3b   :  { %638 = vmatprep.subr.bf16.mxu1 %v797_v0  ;;  %v899_v45 = vand.u32 15, %v389_v44  ;;  %v648_v53 = vpack.c.bf16 %v434_v51, %v433_v50  ;;  %v436_v54 = vld [vmem:[#allocation7 + $0x18] sm:$0xff]  ;;  %v437_v56 = vld [vmem:[#allocation7 + $0x20] sm:$0xff]  ;;  %v438_v57 = vld [vmem:[#allocation7 + $0x28] sm:$0xff]  ;;  %s808_s8 = smov 4   ;;  %s809_s9 = smov 120  }
  0x3c   :  { %v651_v55 = vpack.c.bf16 %v436_v54, %v435_v52  ;;  %v654_v61 = vpack.c.bf16 %v438_v57, %v437_v56  ;;  %v439_v63 = vld [vmem:[#allocation7 + $0x30] sm:$0xff]  ;;  %v441_v3 = vld [vmem:[#allocation7 + $0x40] sm:$0xff]  ;;  %v442_v4 = vld [vmem:[#allocation7 + $0x48] sm:$0xff]  ;;  %s810_s10 = smov [#allocation8]  }
  0x3d   :  { %229 = vrot.lane.b32.xlu0 %v57_v2, %s802_s25  ;;  %577 = vmatmul.mubr.msk.f32.vlgmr.msra.gmra.mrb[0].mxu1 %vm60_vm1, %v57_v2  ;;  %vm406_vm2 = vcmp.ge.s32.totalorder %v899_v45, 1  ;;  %vm413_vm3 = vcmp.ge.s32.totalorder %v899_v45, 2  ;;  %v660_v5 = vpack.c.bf16 %v442_v4, %v441_v3  ;;  %v443_v6 = vld [vmem:[#allocation7 + $0x50] sm:$0xff]  ;;  %v444_v7 = vld [vmem:[#allocation7 + $0x58] sm:$0xff]  ;;  %vm420_vm4 = vcmp.ge.s32.totalorder %v899_v45, 4  ;;  %v445_v9 = vld [vmem:[#allocation7 + $0x60] sm:$0xff] }
  0x3e   :  { %640 = vmatpush3.bf16.msra.mxu1 %v639_v8  ;;  %583 = vmatprep.mubr.msk.f32.mxu1 %vm798_vm0, %v799_v1  ;;  %v663_v8 = vpack.c.bf16 %v444_v7, %v443_v6  ;;  %v446_v10 = vld [vmem:[#allocation7 + $0x68] sm:$0xff]  ;;  %v447_v12 = vld [vmem:[#allocation7 + $0x70] sm:$0xff]  ;;  %v448_v13 = vld [vmem:[#allocation7 + $0x78] sm:$0xff]  ;;  %vm427_vm5 = vcmp.ge.s32.totalorder %v899_v45, 8  ;;  %s528_s11 = sshll.u32 %s810_s10, 4  ;;  %s529_s11 = int_to_ptr.vmem [resolvable:$true] %s528_s11 }
  0x3f   :  { %641 = vmatprep.subr.bf16.mxu1 %v797_v0  ;;  %649 = vmatpush3.bf16.msra.mxu0 %v648_v53  ;;  %p769_p11 = scmp.lt.s32.totalorder %s529_s11, %s529_s11 }
  0x40   :  { %650 = vmatprep.subr.bf16.mxu0 %v797_v0 }
  0x43   :  { %652 = vmatpush3.bf16.msra.mxu0 %v651_v55 }
  0x44   :  { %653 = vmatprep.subr.bf16.mxu0 %v797_v0 }
  0x47   :  { %655 = vmatpush3.bf16.msra.mxu0 %v654_v61 }
  0x48   :  { %656 = vmatprep.subr.bf16.mxu0 %v797_v0 }
  0xab   :  { %v140_v14 = vpop.permute.xlu0 %139  ;;  %v309_v17 = vpop.permute.xlu1 %308 }
  0xac   :  { %584 = vmatmul.mubr.msk.f32.vlgmr.msra.gmra.mrb[2].mxu1 %vm60_vm1, %v140_v14 }
  0xad   :  { %643 = vmatpush3.bf16.msra.mxu1 %v642_v11  ;;  %590 = vmatprep.mubr.msk.f32.mxu1 %vm798_vm0, %v799_v1  ;;  %v666_v11 = vpack.c.bf16 %v446_v10, %v445_v9 }
  0xae   :  { %644 = vmatprep.subr.bf16.mxu1 %v797_v0 }
  0xaf   :  { %v230_v16 = vpop.permute.xlu0 %229 }
  0xb0   :  { %591 = vmatmul.mubr.msk.f32.vlgmr.msra.gmra.mrb[4].mxu1 %vm60_vm1, %v230_v16 }
  0xb1   :  { %646 = vmatpush3.bf16.msra.mxu1 %v645_v15  ;;  %597 = vmatprep.mubr.msk.f32.mxu1 %vm798_vm0, %v799_v1  ;;  %v440_v1 = vld [vmem:[#allocation7 + $0x38] sm:$0xff] }
  0xb2   :  { %v657_v2 = vpack.c.bf16 %v440_v1, %v439_v63 }
  0xb4   :  { %598 = vmatmul.mubr.msk.f32.vlgmr.msra.gmra.mrb[6].mxu1 %vm60_vm1, %v309_v17  ;;  %658 = vmatpush3.bf16.msra.mxu0 %v657_v2 }
  0xb5   :  { %659 = vmatprep.subr.bf16.mxu0 %v797_v0 }
  0xb8   :  { %661 = vmatpush3.bf16.msra.mxu0 %v660_v5 }
  0xb9   :  { %662 = vmatprep.subr.bf16.mxu0 %v797_v0 }
  0xbc   :  { %664 = vmatpush3.bf16.msra.mxu0 %v663_v8 }
  0xbd   :  { %665 = vmatprep.subr.bf16.mxu0 %v797_v0 }
  0xc0   :  { %667 = vmatpush3.bf16.msra.mxu0 %v666_v11 }
  0xc1   :  { %668 = vmatprep.subr.bf16.mxu0 %v797_v0 }
 0x110   :  { %v130_v18 = vpop.f32.mrb[0].mxu1 }
 0x111   :  { %v578_v19 = vpop.f32.mrb[1].mxu1  ;;  %v134_v20 = vmax.f32 %v130_v18, 1e-15  ;;  %v669_v18 = vpack.c.bf16 %v448_v13, %v447_v12 }
 0x113   :  { %v135_v24 = vmin.f32 %v134_v20, 1e+15  ;;  %670 = vmatpush3.bf16.msra.mxu0 %v669_v18 }
 0x17f   :  { %v209_v21 = vpop.f32.mrb[2].mxu1 }
 0x180   :  { %v213_v22 = vmax.f32 %v209_v21, 1e-15  ;;  %v585_v23 = vpop.f32.mrb[3].mxu1 }
 0x182   :  { %v214_v25 = vmin.f32 %v213_v22, 1e+15 }
 0x183   :  { %v299_v26 = vpop.f32.mrb[4].mxu1 }
 0x184   :  { %v215_v27 = vmul.f32 %v214_v25, %v135_v24  ;;  %v592_v28 = vpop.f32.mrb[5].mxu1  ;;  %v303_v29 = vmax.f32 %v299_v26, 1e-15 }
 0x186   :  { %690 = vlog2.f32 %v215_v27  ;;  %v304_v33 = vmin.f32 %v303_v29, 1e+15 }
 0x187   :  { %v378_v30 = vpop.f32.mrb[6].mxu1 }
 0x188   :  { %v382_v31 = vmax.f32 %v378_v30, 1e-15  ;;  %v599_v32 = vpop.f32.mrb[7].mxu1 }
 0x18a   :  { %v383_v34 = vmin.f32 %v382_v31, 1e+15 }
 0x18c   :  { %v384_v35 = vmul.f32 %v383_v34, %v304_v33 }
 0x18e   :  { %692 = vlog2.f32 %v384_v35 }
 0x190   :  { %v691_v36 = vpop.eup %690 }
 0x191   :  { %v217_v37 = vmul.f32 0.6931472, %v691_v36 }
 0x193   :  { %v225_v40 = vadd.f32 %v540_v38, %v217_v37 }
 0x198   :  { %v693_v39 = vpop.eup %692 }
 0x199   :  { %v386_v41 = vmul.f32 0.6931472, %v693_v39 }
 0x19b   :  { %v895_v42 = vadd.f32 %v386_v41, %v225_v40 }
 0x19d   :  { %404 = vrot.lane.b32.xlu0 %v895_v42, %s803_s30  ;;  %402 = vrot.lane.b32.xlu1 %v895_v42, %s804_s5 }
 0x20f   :  { %v405_v46 = vpop.permute.xlu0 %404  ;;  %v403_v47 = vpop.permute.xlu1 %402 }
 0x210   :  { %v407_v48 = vsel %vm406_vm2, %v403_v47, %v405_v46 }
 0x211   :  { %v408_v49 = vmax.f32 %v895_v42, %v407_v48 }
 0x213   :  { %411 = vrot.lane.b32.xlu0 %v408_v49, %s805_s2  ;;  %409 = vrot.lane.b32.xlu1 %v408_v49, %s806_s6 }
 0x285   :  { %v412_v58 = vpop.permute.xlu0 %411  ;;  %v410_v59 = vpop.permute.xlu1 %409 }
 0x286   :  { %v414_v60 = vsel %vm413_vm3, %v410_v59, %v412_v58 }
 0x287   :  { %v415_v62 = vmax.f32 %v408_v49, %v414_v60 }
 0x289   :  { %418 = vrot.lane.b32.xlu0 %v415_v62, %s807_s7  ;;  %416 = vrot.lane.b32.xlu1 %v415_v62, %s808_s8 }
 0x2fb   :  { %v419_v14 = vpop.permute.xlu0 %418  ;;  %v417_v15 = vpop.permute.xlu1 %416 }
 0x2fc   :  { %v421_v16 = vsel %vm420_vm4, %v417_v15, %v419_v14 }
 0x2fd   :  { %v422_v17 = vmax.f32 %v415_v62, %v421_v16 }
 0x2ff   :  { %425 = vrot.lane.b32.xlu0 %v422_v17, %s809_s9  ;;  %423 = vrot.lane.b32.xlu1 %v422_v17, %s794_s26  ;;  %s764_s26 = scalar_lea.vmem %s529_s11, 32 }
 0x300   :  { %p765_p10 = scmp.ne.s32.totalorder %s529_s11, %s764_s26  ;;  %p770_p12 = scmp.lt.s32.totalorder %s764_s26, %s764_s26 }
 0x302   :  { %p771_p13 = por %p770_p12, %p769_p11 }
 0x304   :  { %p772_p0 = pnand %p771_p13, %p765_p10 }
 0x371   :  { %v426_v19 = vpop.permute.xlu0 %425  ;;  %v424_v20 = vpop.permute.xlu1 %423 }
 0x372   :  { %v428_v21 = vsel %vm427_vm5, %v424_v20, %v426_v19 }
 0x373   :  { %v429_v22 = vmax.f32 %v422_v17, %v428_v21 }
 0x375   :  { %v430_v23 = vsub.f32 %v895_v42, %v429_v22 }
 0x377   :  { %v431_v24 = vmul.f32 1.442695, %v430_v23 }
 0x379   :  { %694 = vpow2.f32 %v431_v24 }
 0x383   :  { %v695_v25 = vpop.eup %694 }
 0x384   :  { %633 = vmatmul.mubr.f32.vlgmr.msra.gmra.mrb[0].mxu0 %v695_v25 }
 0x457   :  { %v515_v26 = vpop.f32.mrb[0].mxu0 }
 0x458   :  { %696 = vrcp.f32 %v515_v26  ;;  %v634_v0 = vpop.f32.mrb[1].mxu0 }
 0x462   :  { %v697_v27 = vpop.eup %696 }
 0x463   :  { %v520_v28 = vmul.f32 %v697_v27, %v695_v25 }
 0x465   :  { %521 = vst [vmem:[#allocation8] sm:$0x3] %v520_v28 }
 0x466   :  { %775 = shalt.err (!%p772_p0)
}
 0x467   :  { %s776_s1 = scalar_lea.hbm %s931_s4, 32 }
 0x468   :  { %p777_p1 = scmp.ne.s32.totalorder %s931_s4, %s776_s1  ;;  %p780_p2 = scmp.lt.u32.totalorder %s776_s1, %s931_s4 }
 0x46a   :  { %p782_p3 = pnand %p780_p2, %p777_p1 }
 0x46c   :  { %785 = shalt.err (!%p782_p3)
}
 0x46d   :  { %531 = dma.vmem_to_hbm [thread:$0]  %s529_s11, 32, %s931_s4, [#allocation4]  }
 0x46e   :  { %790 = dma.done.wait [#allocation4], 32  }
 0x46f   :  { %791 = vsyncadd [#allocation4], 4294967264 }
 0x470   :  { %535 = vsyncpa [#allocation3], 1 }
 0x471   :  { %536 = vsyncpa [#allocation6], 1 }
 0x472   :  { %537 = vsyncpa [#allocation4], 1 }

</bundles_post_ra>
